<compile_context>
chip_gen: v5e
topology: v5e:2x2
jax: 0.10.0
libtpu: 0.0.40
codegen_flags: <defaults>
</compile_context>

<pallas_src>
import jax
import jax.numpy as jnp
from jax.experimental import pallas as pl
from jax.experimental.pallas import tpu as pltpu


OUT_W = 8      # lane padding of the final (H -> 2) projection: 32 B/edge
LANE = 128     # edge-tile rounding (sublane/lane friendly for all dtypes)


def _mlp_kernel(f12_ref, w1_ref, b1_ref, w2_ref, b2_ref, w3_ref, b3_ref, o_ref):
    """One (tile_e, 2H) edge tile through Linear->ReLU->Linear->ReLU->Linear."""
    h1 = jnp.dot(f12_ref[...], w1_ref[...],
                 preferred_element_type=jnp.float32) + b1_ref[...]
    h1 = jnp.maximum(h1, 0.0)
    # TODO(synk): Dropout is identity here (eval mode); a training-mode mask
    # could be generated in-kernel with pltpu.prng_seed / prng_random_bits.
    h2 = jnp.dot(h1.astype(w2_ref.dtype), w2_ref[...],
                 preferred_element_type=jnp.float32) + b2_ref[...]
    h2 = jnp.maximum(h2, 0.0)
    out = jnp.dot(h2.astype(w3_ref.dtype), w3_ref[...],
                  preferred_element_type=jnp.float32) + b3_ref[...]
    o_ref[...] = out.astype(o_ref.dtype)


def _round_up(x, m):
    return ((x + m - 1) // m) * m


def _cdiv(a, b):
    return (a + b - 1) // b


def _vmem_capacity_bytes():
    """Physical VMEM per TensorCore (host-side query; conservative fallback)."""
    try:
        return int(pltpu.get_tpu_info().vmem_capacity_bytes)
    except Exception:
        return 64 << 20          # v7x per-TensorCore VMEM (smallest generation)


def _vmem_bytes_estimate(tile_e, h, act_bytes):
    """Rough VMEM footprint: pipelined activation blocks + weights + temporaries."""
    weights = ((2 * h * 4 * h + 4 * h * h + h * OUT_W) * act_bytes
               + (4 * h + h + OUT_W) * 4)
    acts_in = 2 * tile_e * (2 * h) * act_bytes        # f12 block, double-buffered
    acts_out = 2 * tile_e * LANE * 4                  # out block (lane-padded), dbuf
    inter = tile_e * (4 * h + h + LANE) * 4           # h1/h2/out f32 temporaries
    return 2 * weights + acts_in + acts_out + inter


def _choose_tile_e(num_edges, requested, h, act_bytes, budget_bytes):
    """Largest 128-row-aligned tile <= requested that fits the VMEM budget and
    (when possible) leaves at least 2 parallel grid steps for megacore."""
    te = max(LANE, (requested // LANE) * LANE)
    te = min(te, _round_up(num_edges, LANE))          # not wastefully larger than E
    while te > LANE and _vmem_bytes_estimate(te, h, act_bytes) > budget_bytes:
        te = max(LANE, (te // 2 // LANE) * LANE)
    if _cdiv(num_edges, te) < 2:                      # keep both v7x TCs busy
        te = min(te, max(LANE, _round_up(_cdiv(num_edges, 2), LANE)))
    return te


def extractor_mlp_forward(emb, edge_index, params_linear, *,
                          tile_e=4096, compute_dtype=jnp.bfloat16):
    """ExtractorMLP forward.

    emb: [N, H] float32; edge_index: [2, E] int32;
    params_linear: [(W1, b1), (W2, b2), (W3, b3)] with shapes
      (2H, 4H)/(1, 4H), (4H, H)/(1, H), (H, 2)/(1, 2).
    Returns attention logits [E, 2] float32.
    """
    (w1, b1), (w2, b2), (w3, b3) = params_linear
    _, h = emb.shape
    e = edge_index.shape[1]
    h1_dim = w1.shape[1]          # 4H
    h2_dim = w2.shape[1]          # H
    out_dim = w3.shape[1]         # 2
    assert w1.shape[0] == 2 * h and h2_dim == h and out_dim <= OUT_W

    act_bytes = jnp.dtype(compute_dtype).itemsize
    cap = _vmem_capacity_bytes()
    budget = min(cap // 2, 48 << 20)                  # ~48 MiB v5e/v6e, ~32 MiB v7x
    te = _choose_tile_e(e, tile_e, h, act_bytes, budget)
    grid = (_cdiv(e, te),)
    e_pad = grid[0] * te

    # Edge-endpoint gather + concat in XLA (padded rows reuse index 0 and are
    # discarded below).  In bf16 mode emb is quantized *before* the gather.
    # TODO(synk): f12 still round-trips HBM once (gather write + kernel read);
    # an in-kernel row gather with emb resident in VMEM would cut another
    # ~30-50% of traffic but needs a dependable in-kernel gather path.
    col = jnp.pad(edge_index[0], (0, e_pad - e))
    row = jnp.pad(edge_index[1], (0, e_pad - e))
    emb_c = emb.astype(compute_dtype)
    f12 = jnp.concatenate([emb_c[col], emb_c[row]], axis=-1)   # [E_pad, 2H]

    w1c = w1.astype(compute_dtype)
    w2c = w2.astype(compute_dtype)
    # Final H->2 projection zero-padded to H->8 (32 B/edge output).
    w3p = (jnp.zeros((h, OUT_W), jnp.float32).at[:, :out_dim].set(w3)
           .astype(compute_dtype))
    b3p = jnp.zeros((1, OUT_W), jnp.float32).at[:, :out_dim].set(b3)
    b1f = b1.astype(jnp.float32)
    b2f = b2.astype(jnp.float32)

    weight_bytes = ((2 * h * h1_dim + h1_dim * h2_dim + h2_dim * OUT_W) * act_bytes
                    + (h1_dim + h2_dim + OUT_W) * 4)
    cost = pl.CostEstimate(
        flops=2 * e_pad * (2 * h * h1_dim + h1_dim * h2_dim + h2_dim * OUT_W),
        transcendentals=0,
        bytes_accessed=(e_pad * 2 * h * act_bytes + weight_bytes
                        + e_pad * OUT_W * 4))

    est = _vmem_bytes_estimate(te, h, act_bytes)
    vmem_limit = None
    if est > (12 << 20):   # may exceed the smallest default scoped VMEM (v5e: 16 MiB)
        vmem_limit = int(min(max(est + est // 4, 32 << 20), 48 << 20, cap * 3 // 4))

    grid_spec = pltpu.PrefetchScalarGridSpec(
        num_scalar_prefetch=0,
        grid=grid,
        in_specs=[
            pl.BlockSpec((te, 2 * h), lambda i: (i, 0)),        # f12 tile
            pl.BlockSpec((2 * h, h1_dim), lambda i: (0, 0)),    # W1
            pl.BlockSpec((1, h1_dim), lambda i: (0, 0)),        # b1
            pl.BlockSpec((h1_dim, h2_dim), lambda i: (0, 0)),   # W2
            pl.BlockSpec((1, h2_dim), lambda i: (0, 0)),        # b2
            pl.BlockSpec((h2_dim, OUT_W), lambda i: (0, 0)),    # W3 (padded)
            pl.BlockSpec((1, OUT_W), lambda i: (0, 0)),         # b3 (padded)
        ],
        out_specs=pl.BlockSpec((te, OUT_W), lambda i: (i, 0)),
    )

    att_pad = pl.pallas_call(
        _mlp_kernel,
        out_shape=jax.ShapeDtypeStruct((e_pad, OUT_W), jnp.float32),
        grid_spec=grid_spec,
        compiler_params=pltpu.CompilerParams(
            dimension_semantics=("parallel",),
            vmem_limit_bytes=vmem_limit),
        cost_estimate=cost,
    )(f12, w1c, b1f, w2c, b2f, w3p, b3p)

    # Drop the padded edge rows and the padded output lanes.
    return att_pad[:e, :out_dim]


def make_params(key, hidden_size):
    """Deterministic synthetic params for MLP([2H, 4H, H, 2])."""
    dims = [hidden_size * 2, hidden_size * 4, hidden_size, 2]
    params = []
    for i in range(len(dims) - 1):
        key, kw, kb = jax.random.split(key, 3)
        scale = 1.0 / jnp.sqrt(jnp.float32(dims[i]))
        w = jax.random.uniform(kw, (dims[i], dims[i + 1]), jnp.float32,
                               minval=-scale, maxval=scale)
        b = jax.random.uniform(kb, (1, dims[i + 1]), jnp.float32,
                               minval=-scale, maxval=scale)
        params.append((w, b))
    return params


if __name__ == "__main__":
    key = jax.random.PRNGKey(0)
    num_nodes = 16
    hidden_size = 32
    num_edges = 200          # deliberately NOT a multiple of the tile size

    key, k_emb, k_col, k_row, k_par = jax.random.split(key, 5)
    emb = jax.random.normal(k_emb, (num_nodes, hidden_size), jnp.float32)
    col = jax.random.randint(k_col, (num_edges,), 0, num_nodes, jnp.int32)
    row = jax.random.randint(k_row, (num_edges,), 0, num_nodes, jnp.int32)
    edge_index = jnp.stack([col, row], axis=0)       # [2, E]
    params_linear = make_params(k_par, hidden_size)

    # Reference in plain JAX (eval mode: dropout = identity).
    f12 = jnp.concatenate([emb[edge_index[0]], emb[edge_index[1]]], axis=-1)
    ref = f12
    for li, (w, b) in enumerate(params_linear):
        ref = ref @ w + b
        if li < len(params_linear) - 1:
            ref = jnp.maximum(ref, 0.0)

    # f32 run: exact against the plain-JAX reference.
    att_f32 = extractor_mlp_forward(emb, edge_index, params_linear,
                                    compute_dtype=jnp.float32)
    att_f32 = jax.block_until_ready(att_f32)
    assert att_f32.shape == (num_edges, 2)
    assert jnp.allclose(att_f32, ref, atol=5e-4, rtol=5e-4)

    # Default path: bf16 activations/weights with f32 accumulation (inputs
    # quantized before the first matmul -> looser tolerance).
    att = extractor_mlp_forward(emb, edge_index, params_linear)
    att = jax.block_until_ready(att)
    assert att.shape == (num_edges, 2)
    assert jnp.allclose(att, ref, atol=5e-2, rtol=5e-2)

    print("KERNEL_OK")
</pallas_src>

<mosaic_0001>
module attributes {stable_mosaic.version = 11 : i64} {
  func.func @_mlp_kernel(%arg0: i32, %arg1: memref<128x64xf32, #tpu.memory_space<vmem>>, %arg2: memref<64x128xf32, #tpu.memory_space<vmem>>, %arg3: memref<1x128xf32, #tpu.memory_space<vmem>>, %arg4: memref<128x32xf32, #tpu.memory_space<vmem>>, %arg5: memref<1x32xf32, #tpu.memory_space<vmem>>, %arg6: memref<32x8xf32, #tpu.memory_space<vmem>>, %arg7: memref<1x8xf32, #tpu.memory_space<vmem>>, %arg8: memref<128x8xf32, #tpu.memory_space<vmem>>) attributes {dimension_semantics = [#tpu.dimension_semantics<parallel>], iteration_bounds = array<i64: 2>, scalar_prefetch = 0 : i64, scratch_operands = 0 : i64, tpu.core_type = #tpu.core_type<tc>, window_params = [{transform_indices = @transform_0, window_bounds = array<i64: 128, 64>}, {pipeline_mode = #tpu.pipeline_mode<synchronous>, transform_indices = @transform_1, window_bounds = array<i64: 64, 128>}, {pipeline_mode = #tpu.pipeline_mode<synchronous>, transform_indices = @transform_2, window_bounds = array<i64: 1, 128>}, {pipeline_mode = #tpu.pipeline_mode<synchronous>, transform_indices = @transform_3, window_bounds = array<i64: 128, 32>}, {pipeline_mode = #tpu.pipeline_mode<synchronous>, transform_indices = @transform_4, window_bounds = array<i64: 1, 32>}, {pipeline_mode = #tpu.pipeline_mode<synchronous>, transform_indices = @transform_5, window_bounds = array<i64: 32, 8>}, {pipeline_mode = #tpu.pipeline_mode<synchronous>, transform_indices = @transform_6, window_bounds = array<i64: 1, 8>}, {transform_indices = @transform_7, window_bounds = array<i64: 128, 8>}]} {
    %c0 = arith.constant 0 : index
    %c0_0 = arith.constant 0 : index
    %0 = vector.load %arg1[%c0, %c0_0] : memref<128x64xf32, #tpu.memory_space<vmem>>, vector<128x64xf32>
    %c0_1 = arith.constant 0 : index
    %c0_2 = arith.constant 0 : index
    %1 = vector.load %arg2[%c0_1, %c0_2] : memref<64x128xf32, #tpu.memory_space<vmem>>, vector<64x128xf32>
    %cst = arith.constant dense<0.000000e+00> : vector<128x128xf32>
    %2 = tpu.matmul %0, %1, %cst {dimension_numbers = #tpu.dot_dimension_numbers<[1], [0], [0], [1], [0, 0, 1, 1], [], []>} : vector<128x64xf32>, vector<64x128xf32>, vector<128x128xf32> -> vector<128x128xf32>
    %c0_3 = arith.constant 0 : index
    %c0_4 = arith.constant 0 : index
    %3 = vector.load %arg3[%c0_3, %c0_4] : memref<1x128xf32, #tpu.memory_space<vmem>>, vector<1x128xf32>
    %4 = vector.broadcast %3 : vector<1x128xf32> to vector<128x128xf32>
    %5 = arith.addf %2, %4 : vector<128x128xf32>
    %cst_5 = arith.constant 0.000000e+00 : f32
    %6 = vector.broadcast %cst_5 : f32 to vector<128x128xf32>
    %7 = arith.maximumf %5, %6 : vector<128x128xf32>
    %c0_6 = arith.constant 0 : index
    %c0_7 = arith.constant 0 : index
    %8 = vector.load %arg4[%c0_6, %c0_7] : memref<128x32xf32, #tpu.memory_space<vmem>>, vector<128x32xf32>
    %cst_8 = arith.constant dense<0.000000e+00> : vector<128x32xf32>
    %9 = tpu.matmul %7, %8, %cst_8 {dimension_numbers = #tpu.dot_dimension_numbers<[1], [0], [0], [1], [0, 0, 1, 1], [], []>} : vector<128x128xf32>, vector<128x32xf32>, vector<128x32xf32> -> vector<128x32xf32>
    %c0_9 = arith.constant 0 : index
    %c0_10 = arith.constant 0 : index
    %10 = vector.load %arg5[%c0_9, %c0_10] : memref<1x32xf32, #tpu.memory_space<vmem>>, vector<1x32xf32>
    %11 = vector.broadcast %10 : vector<1x32xf32> to vector<128x32xf32>
    %12 = arith.addf %9, %11 : vector<128x32xf32>
    %cst_11 = arith.constant 0.000000e+00 : f32
    %13 = vector.broadcast %cst_11 : f32 to vector<128x32xf32>
    %14 = arith.maximumf %12, %13 : vector<128x32xf32>
    %c0_12 = arith.constant 0 : index
    %c0_13 = arith.constant 0 : index
    %15 = vector.load %arg6[%c0_12, %c0_13] : memref<32x8xf32, #tpu.memory_space<vmem>>, vector<32x8xf32>
    %cst_14 = arith.constant dense<0.000000e+00> : vector<128x8xf32>
    %16 = tpu.matmul %14, %15, %cst_14 {dimension_numbers = #tpu.dot_dimension_numbers<[1], [0], [0], [1], [0, 0, 1, 1], [], []>} : vector<128x32xf32>, vector<32x8xf32>, vector<128x8xf32> -> vector<128x8xf32>
    %c0_15 = arith.constant 0 : index
    %c0_16 = arith.constant 0 : index
    %17 = vector.load %arg7[%c0_15, %c0_16] : memref<1x8xf32, #tpu.memory_space<vmem>>, vector<1x8xf32>
    %18 = vector.broadcast %17 : vector<1x8xf32> to vector<128x8xf32>
    %19 = arith.addf %16, %18 : vector<128x8xf32>
    %c0_17 = arith.constant 0 : index
    %c0_18 = arith.constant 0 : index
    %20 = vector.load %arg8[%c0_17, %c0_18] : memref<128x8xf32, #tpu.memory_space<vmem>>, vector<128x8xf32>
    tpu.vector_store %arg8[%c0_17, %c0_18], %19 {strides = array<i32>} : memref<128x8xf32, #tpu.memory_space<vmem>>, vector<128x8xf32>,
    return
  }
  func.func @transform_0(%arg0: i32) -> (i32, i32) {
    %c0_i32 = arith.constant 0 : i32
    %c0_i32_0 = arith.constant 0 : i32
    return %arg0, %c0_i32 : i32, i32
  }
  func.func @transform_1(%arg0: i32) -> (i32, i32) {
    %c0_i32 = arith.constant 0 : i32
    %c0_i32_0 = arith.constant 0 : i32
    %c0_i32_1 = arith.constant 0 : i32
    return %c0_i32, %c0_i32_0 : i32, i32
  }
  func.func @transform_2(%arg0: i32) -> (i32, i32) {
    %c0_i32 = arith.constant 0 : i32
    %c0_i32_0 = arith.constant 0 : i32
    %c0_i32_1 = arith.constant 0 : i32
    return %c0_i32, %c0_i32_0 : i32, i32
  }
  func.func @transform_3(%arg0: i32) -> (i32, i32) {
    %c0_i32 = arith.constant 0 : i32
    %c0_i32_0 = arith.constant 0 : i32
    %c0_i32_1 = arith.constant 0 : i32
    return %c0_i32, %c0_i32_0 : i32, i32
  }
  func.func @transform_4(%arg0: i32) -> (i32, i32) {
    %c0_i32 = arith.constant 0 : i32
    %c0_i32_0 = arith.constant 0 : i32
    %c0_i32_1 = arith.constant 0 : i32
    return %c0_i32, %c0_i32_0 : i32, i32
  }
  func.func @transform_5(%arg0: i32) -> (i32, i32) {
    %c0_i32 = arith.constant 0 : i32
    %c0_i32_0 = arith.constant 0 : i32
    %c0_i32_1 = arith.constant 0 : i32
    return %c0_i32, %c0_i32_0 : i32, i32
  }
  func.func @transform_6(%arg0: i32) -> (i32, i32) {
    %c0_i32 = arith.constant 0 : i32
    %c0_i32_0 = arith.constant 0 : i32
    %c0_i32_1 = arith.constant 0 : i32
    return %c0_i32, %c0_i32_0 : i32, i32
  }
  func.func @transform_7(%arg0: i32) -> (i32, i32) {
    %c0_i32 = arith.constant 0 : i32
    %c0_i32_0 = arith.constant 0 : i32
    return %arg0, %c0_i32 : i32, i32
  }
}

</mosaic_0001>

<bundles_post_ra>
// kernel: tpu_custom_call.1
= control target key start
LH: loop header
LB: loop body
LE: loop exit
PB: predicated region body
PF: predicated region fallthrough
CT: control target
= control target key end

     0   :  { %s854_s24 = smov 0   ;;  %s1091_s0 = inlined_call_operand.vmem [shape: f32[256,64], index: 0, kind: input, shape index: {}]   ;;  %s1092_s1 = inlined_call_operand.vmem [shape: f32[64,128], index: 1, kind: input, shape index: {}]   ;;  %s1093_s2 = inlined_call_operand.vmem [shape: f32[1,128], index: 2, kind: input, shape index: {}]   ;;  %s1094_s3 = inlined_call_operand.vmem [shape: f32[128,32], index: 3, kind: input, shape index: {}]   ;;  %s1095_s4 = inlined_call_operand.vmem [shape: f32[1,32], index: 4, kind: input, shape index: {}]   ;;  %s1096_s5 = inlined_call_operand.vmem [shape: f32[32,8], index: 5, kind: input, shape index: {}]   ;;  %s1097_s6 = inlined_call_operand.vmem [shape: f32[1,8], index: 6, kind: input, shape index: {}]   ;;  %s1098_s7 = inlined_call_operand.vmem [shape: f32[256,8], index: 7, kind: output, shape index: {}]  }
   0x1 LB: > { %s736_s25 = sadd.s32 4294967295, %s812_s24   ;;  %p740_p0 = scmp.ge.s32.totalorder %s812_s24, 1  ;;  %s812_s24 = sphi %s854_s24, %s17_s24  }
   0x2   : > { %p238_p1 = scmp.lt.s32.totalorder %s812_s24, 3 }
   0x4   : > { %p239_p2 = pnand %p740_p0, %p238_p1 }
   0x5   : > { %s741_s30 = sshll.u32 (!%p239_p2), %s736_s25, 4 }
   0x6   : > { %242 = sbr.rel (%p239_p2) target bundleno = 548 (0x224), region = 48  ;;  %p271_p3 = scmp.lt.s32.totalorder (!%p239_p2), %s741_s30, 31 }
   0xb   : > { %v305_v0 = vld [vmem:[%s1092_s1 + $0x38] sm:$0xff]  ;;  %v304_v1 = vld [vmem:[%s1092_s1 + $0x30] sm:$0xff]  ;;  %v303_v2 = vld [vmem:[%s1092_s1 + $0x28] sm:$0xff]  ;;  %s1100_s30 = smov (!%p271_p3, %s741_s30), 31  ;;  %vm310_vm0 = vcmask 523264   ;;  %vm549_vm1 = vcmask 261120  }
   0xc   : > { %367 = vmatpush.msra.mxu0 %v305_v0  ;;  %v302_v3 = vld [vmem:[%s1092_s1 + $0x20] sm:$0xff]  ;;  %v301_v4 = vld [vmem:[%s1092_s1 + $0x18] sm:$0xff]  ;;  %s742_s14 = sshll.u32 %s1100_s30, 3  ;;  %v300_v5 = vld [vmem:[%s1092_s1 + $0x10] sm:$0xff]  ;;  %vm663_vm2 = vcmask 64512  }
   0xd   : > { %v299_v6 = vld [vmem:[%s1092_s1 + $0x8] sm:$0xff]  ;;  %s891_s21 = scalar_lea.vmem %s1091_s0, %s742_s14  ;;  %v298_v7 = vld [vmem:[%s1092_s1] sm:$0xff]  ;;  %v455_v17 = vld [vmem:[%s1094_s3 + $0x78] sm:$0xff]  ;;  %s1054_s12 = scalar_lea.vmem %s1098_s7, %s742_s14 }
   0xe   : > { %368 = vmatpush.msra.mxu0 %v304_v1  ;;  %v282_v8 = vld [vmem:[%s891_s21] sm:$0xff]  ;;  %v283_v9 = vld [vmem:[%s891_s21 + $0x8] sm:$0xff]  ;;  %v284_v10 = vld [vmem:[%s891_s21 + $0x10] sm:$0xff]  ;;  %460 = vmatpush.msra.mxu1 %v455_v17 }
   0xf   : > { %v285_v11 = vld [vmem:[%s891_s21 + $0x18] sm:$0xff]  ;;  %v286_v12 = vld [vmem:[%s891_s21 + $0x20] sm:$0xff]  ;;  %v287_v13 = vld [vmem:[%s891_s21 + $0x28] sm:$0xff]  ;;  %779 = vmatpush.msra.mxu3 %v455_v17 }
  0x10   : > { %369 = vmatpush.msra.mxu0 %v303_v2  ;;  %v288_v14 = vld [vmem:[%s891_s21 + $0x30] sm:$0xff]  ;;  %v289_v15 = vld [vmem:[%s891_s21 + $0x38] sm:$0xff]  ;;  %v290_v16 = vld [vmem:[%s891_s21 + $0x40] sm:$0xff] }
  0x11   : > { %v454_v18 = vld [vmem:[%s1094_s3 + $0x70] sm:$0xff]  ;;  %v453_v19 = vld [vmem:[%s1094_s3 + $0x68] sm:$0xff]  ;;  %v452_v21 = vld [vmem:[%s1094_s3 + $0x60] sm:$0xff] }
  0x12   : > { %370 = vmatpush.msra.mxu0 %v302_v3  ;;  %461 = vmatpush.msra.mxu1 %v454_v18  ;;  %v291_v20 = vld [vmem:[%s891_s21 + $0x48] sm:$0xff]  ;;  %v451_v22 = vld [vmem:[%s1094_s3 + $0x58] sm:$0xff]  ;;  %v450_v23 = vld [vmem:[%s1094_s3 + $0x50] sm:$0xff] }
  0x13   : > { %780 = vmatpush.msra.mxu3 %v454_v18  ;;  %v449_v24 = vld [vmem:[%s1094_s3 + $0x48] sm:$0xff]  ;;  %v292_v25 = vld [vmem:[%s891_s21 + $0x50] sm:$0xff]  ;;  %v448_v26 = vld [vmem:[%s1094_s3 + $0x40] sm:$0xff] }
  0x14   : > { %371 = vmatpush.msra.mxu0 %v301_v4  ;;  %462 = vmatpush.msra.mxu1 %v453_v19  ;;  %v447_v27 = vld [vmem:[%s1094_s3 + $0x38] sm:$0xff]  ;;  %v446_v28 = vld [vmem:[%s1094_s3 + $0x30] sm:$0xff]  ;;  %v445_v29 = vld [vmem:[%s1094_s3 + $0x28] sm:$0xff] }
  0x15   : > { %781 = vmatpush.msra.mxu3 %v453_v19  ;;  %v293_v30 = vld [vmem:[%s891_s21 + $0x58] sm:$0xff]  ;;  %v444_v31 = vld [vmem:[%s1094_s3 + $0x20] sm:$0xff]  ;;  %v442_v33 = vld [vmem:[%s1094_s3 + $0x10] sm:$0xff] }
  0x16   : > { %372 = vmatpush.msra.mxu0 %v300_v5  ;;  %463 = vmatpush.msra.mxu1 %v452_v21  ;;  %v443_v32 = vld [vmem:[%s1094_s3 + $0x18] sm:$0xff]  ;;  %v294_v34 = vld [vmem:[%s891_s21 + $0x60] sm:$0xff]  ;;  %v441_v35 = vld [vmem:[%s1094_s3 + $0x8] sm:$0xff] }
  0x17   : > { %782 = vmatpush.msra.mxu3 %v452_v21  ;;  %v440_v36 = vld [vmem:[%s1094_s3] sm:$0xff]  ;;  %v295_v37 = vld [vmem:[%s891_s21 + $0x68] sm:$0xff]  ;;  %v296_v38 = vld [vmem:[%s891_s21 + $0x70] sm:$0xff] }
  0x18   : > { %373 = vmatpush.msra.mxu0 %v299_v6  ;;  %464 = vmatpush.msra.mxu1 %v451_v22  ;;  %v297_v39 = vld [vmem:[%s891_s21 + $0x78] sm:$0xff]  ;;  %v979_v40 = vld [vmem:[%s1093_s2] ss:$0 sm:$0xff]  ;;  %v542_v18 = vld [vmem:[%s1096_s5 + $0x8] sm:$0xff] }
  0x19   : > { %783 = vmatpush.msra.mxu3 %v451_v22  ;;  %v541_v19 = vld [vmem:[%s1096_s5] sm:$0xff] }
  0x1a   : > { %374 = vmatpush.msra.mxu0 %v298_v7  ;;  %465 = vmatpush.msra.mxu1 %v450_v23 }
  0x1b   : > { %745 = vmatmul.msk.f32.vlgmr.msra.gmra.mxu0 %vm310_vm0, %v282_v8  ;;  %784 = vmatpush.msra.mxu3 %v450_v23 }
  0x1c   : > { %466 = vmatpush.msra.mxu1 %v449_v24 }
  0x1d   : > { %785 = vmatpush.msra.mxu3 %v449_v24 }
  0x1e   : > { %467 = vmatpush.msra.mxu1 %v448_v26 }
  0x1f   : > { %786 = vmatpush.msra.mxu3 %v448_v26 }
  0x20   : > { %468 = vmatpush.msra.mxu1 %v447_v27 }
  0x21   : > { %787 = vmatpush.msra.mxu3 %v447_v27 }
  0x22   : > { %469 = vmatpush.msra.mxu1 %v446_v28 }
  0x23   : > { %746 = vmatmul.msk.f32.gmra.mxu0 %vm310_vm0, %v283_v9  ;;  %788 = vmatpush.msra.mxu3 %v446_v28 }
  0x24   : > { %470 = vmatpush.msra.mxu1 %v445_v29 }
  0x25   : > { %789 = vmatpush.msra.mxu3 %v445_v29  ;;  %v1012_v29 = vld [vmem:[%s1095_s4] ss:$0 sm:$0xff] }
  0x26   : > { %471 = vmatpush.msra.mxu1 %v444_v31 }
  0x27   : > { %790 = vmatpush.msra.mxu3 %v444_v31 }
  0x28   : > { %472 = vmatpush.msra.mxu1 %v443_v32 }
  0x29   : > { %791 = vmatpush.msra.mxu3 %v443_v32 }
  0x2a   : > { %473 = vmatpush.msra.mxu1 %v442_v33 }
  0x2b   : > { %747 = vmatmul.msk.f32.gmra.mxu0 %vm310_vm0, %v284_v10  ;;  %792 = vmatpush.msra.mxu3 %v442_v33 }
  0x2c   : > { %474 = vmatpush.msra.mxu1 %v441_v35 }
  0x2d   : > { %793 = vmatpush.msra.mxu3 %v441_v35 }
  0x2e   : > { %475 = vmatpush.msra.mxu1 %v440_v36 }
  0x2f   : > { %794 = vmatpush.msra.mxu3 %v440_v36 }
  0x33   : > { %748 = vmatmul.msk.f32.gmra.mxu0 %vm310_vm0, %v285_v11 }
  0x3b   : > { %749 = vmatmul.msk.f32.gmra.mxu0 %vm310_vm0, %v286_v12 }
  0x43   : > { %750 = vmatmul.msk.f32.gmra.mxu0 %vm310_vm0, %v287_v13  ;;  %v544_v13 = vld [vmem:[%s1096_s5 + $0x18] sm:$0xff] }
  0x44   : > { %610 = vmatpush.msra.mxu2 %v544_v13 }
  0x4b   : > { %751 = vmatmul.msk.f32.gmra.mxu0 %vm310_vm0, %v288_v14 }
  0x53   : > { %752 = vmatmul.msk.f32.gmra.mxu0 %vm310_vm0, %v289_v15 }
  0x5b   : > { %753 = vmatmul.msk.f32.gmra.mxu0 %vm310_vm0, %v290_v16  ;;  %v543_v16 = vld [vmem:[%s1096_s5 + $0x10] sm:$0xff] }
  0x5c   : > { %611 = vmatpush.msra.mxu2 %v543_v16 }
  0x5e   : > { %612 = vmatpush.msra.mxu2 %v542_v18 }
  0x60   : > { %613 = vmatpush.msra.mxu2 %v541_v19 }
  0x63   : > { %754 = vmatmul.msk.f32.gmra.mxu0 %vm310_vm0, %v291_v20 }
  0x6b   : > { %755 = vmatmul.msk.f32.gmra.mxu0 %vm310_vm0, %v292_v25 }
  0x73   : > { %756 = vmatmul.msk.f32.gmra.mxu0 %vm310_vm0, %v293_v30 }
  0x7b   : > { %757 = vmatmul.msk.f32.gmra.mxu0 %vm310_vm0, %v294_v34 }
  0x83   : > { %758 = vmatmul.msk.f32.gmra.mxu0 %vm310_vm0, %v295_v37 }
  0x8b   : > { %759 = vmatmul.msk.f32.gmra.mxu0 %vm310_vm0, %v296_v38 }
  0x93   : > { %760 = vmatmul.msk.f32.gmra.mxu0 %vm310_vm0, %v297_v39 }
  0x98   : > { %v376_v41 = vpop.f32.mrf.mxu0 }
  0x99   : > { %v377_v42 = vadd.f32 %v979_v40, %v376_v41 }
  0x9b   : > { %v424_v43 = vmax.f32 %v377_v42, 0.0 }
  0x9d   : > { %476 = vmatmul.f32.vlgmr.msra.gmra.mxu1 %v424_v43 }
  0xa0   : > { %v379_v44 = vpop.f32.mrf.mxu0 }
  0xa1   : > { %v380_v45 = vadd.f32 %v979_v40, %v379_v44 }
  0xa3   : > { %v425_v46 = vmax.f32 %v380_v45, 0.0 }
  0xa5   : > { %479 = vmatmul.f32.gmra.mxu1 %v425_v46 }
  0xa8   : > { %v382_v47 = vpop.f32.mrf.mxu0 }
  0xa9   : > { %v383_v48 = vadd.f32 %v979_v40, %v382_v47 }
  0xab   : > { %v426_v49 = vmax.f32 %v383_v48, 0.0 }
  0xad   : > { %482 = vmatmul.f32.gmra.mxu1 %v426_v49 }
  0xb0   : > { %v385_v50 = vpop.f32.mrf.mxu0 }
  0xb1   : > { %v386_v51 = vadd.f32 %v979_v40, %v385_v50 }
  0xb3   : > { %v427_v52 = vmax.f32 %v386_v51, 0.0 }
  0xb5   : > { %485 = vmatmul.f32.gmra.mxu1 %v427_v52 }
  0xb8   : > { %v388_v53 = vpop.f32.mrf.mxu0 }
  0xb9   : > { %v389_v54 = vadd.f32 %v979_v40, %v388_v53 }
  0xbb   : > { %v428_v55 = vmax.f32 %v389_v54, 0.0 }
  0xbd   : > { %488 = vmatmul.f32.gmra.mxu1 %v428_v55 }
  0xc0   : > { %v391_v56 = vpop.f32.mrf.mxu0 }
  0xc1   : > { %v392_v57 = vadd.f32 %v979_v40, %v391_v56 }
  0xc3   : > { %v429_v58 = vmax.f32 %v392_v57, 0.0 }
  0xc5   : > { %491 = vmatmul.f32.gmra.mxu1 %v429_v58 }
  0xc8   : > { %v394_v59 = vpop.f32.mrf.mxu0 }
  0xc9   : > { %v395_v60 = vadd.f32 %v979_v40, %v394_v59 }
  0xcb   : > { %v430_v61 = vmax.f32 %v395_v60, 0.0 }
  0xcd   : > { %494 = vmatmul.f32.gmra.mxu1 %v430_v61 }
  0xd0   : > { %v397_v62 = vpop.f32.mrf.mxu0 }
  0xd1   : > { %v398_v63 = vadd.f32 %v979_v40, %v397_v62 }
  0xd3   : > { %v431_v0 = vmax.f32 %v398_v63, 0.0 }
  0xd5   : > { %497 = vmatmul.f32.gmra.mxu1 %v431_v0 }
  0xd8   : > { %v400_v1 = vpop.f32.mrf.mxu0 }
  0xd9   : > { %v401_v2 = vadd.f32 %v979_v40, %v400_v1 }
  0xdb   : > { %v432_v3 = vmax.f32 %v401_v2, 0.0 }
  0xdd   : > { %500 = vmatmul.f32.gmra.mxu1 %v432_v3 }
  0xe0   : > { %v403_v4 = vpop.f32.mrf.mxu0 }
  0xe1   : > { %v404_v5 = vadd.f32 %v979_v40, %v403_v4 }
  0xe3   : > { %v433_v6 = vmax.f32 %v404_v5, 0.0 }
  0xe5   : > { %503 = vmatmul.f32.gmra.mxu1 %v433_v6 }
  0xe8   : > { %v406_v7 = vpop.f32.mrf.mxu0 }
  0xe9   : > { %v407_v8 = vadd.f32 %v979_v40, %v406_v7 }
  0xeb   : > { %v434_v9 = vmax.f32 %v407_v8, 0.0 }
  0xed   : > { %506 = vmatmul.f32.gmra.mxu1 %v434_v9 }
  0xf0   : > { %v409_v10 = vpop.f32.mrf.mxu0 }
  0xf1   : > { %v410_v11 = vadd.f32 %v979_v40, %v409_v10 }
  0xf3   : > { %v435_v12 = vmax.f32 %v410_v11, 0.0 }
  0xf5   : > { %509 = vmatmul.f32.vlgmr.msra.gmra.mxu3 %v435_v12 }
  0xf8   : > { %v412_v14 = vpop.f32.mrf.mxu0 }
  0xf9   : > { %v413_v15 = vadd.f32 %v979_v40, %v412_v14  ;;  %v805_v14 = vld [vmem:[%s1097_s6] ss:$0 sm:$0xff] }
  0xfb   : > { %v436_v17 = vmax.f32 %v413_v15, 0.0 }
  0xfd   : > { %512 = vmatmul.f32.gmra.mxu3 %v436_v17 }
 0x100   : > { %v415_v20 = vpop.f32.mrf.mxu0 }
 0x101   : > { %v416_v21 = vadd.f32 %v979_v40, %v415_v20 }
 0x103   : > { %v437_v22 = vmax.f32 %v416_v21, 0.0 }
 0x105   : > { %515 = vmatmul.f32.gmra.mxu3 %v437_v22 }
 0x108   : > { %v418_v23 = vpop.f32.mrf.mxu0 }
 0x109   : > { %v419_v24 = vadd.f32 %v979_v40, %v418_v23 }
 0x10b   : > { %v438_v25 = vmax.f32 %v419_v24, 0.0 }
 0x10d   : > { %518 = vmatmul.f32.gmra.mxu3 %v438_v25 }
 0x110   : > { %v421_v26 = vpop.f32.mrf.mxu0 }
 0x111   : > { %v422_v27 = vadd.f32 %v979_v40, %v421_v26 }
 0x113   : > { %v439_v28 = vmax.f32 %v422_v27, 0.0 }
 0x115   : > { %521 = vmatmul.f32.gmra.mxu3 %v439_v28 }
 0x11a   : > { %v477_v30 = vpop.f32.mrf.mxu1 }
 0x11b   : > { %v478_v31 = vadd.f32 %v1012_v29, %v477_v30 }
 0x11d   : > { %v525_v32 = vmax.f32 %v478_v31, 0.0 }
 0x11f   : > { %761 = vmatmul.msk.f32.vlgmr.msra.gmra.mxu2 %vm549_vm1, %v525_v32 }
 0x122   : > { %v480_v33 = vpop.f32.mrf.mxu1 }
 0x123   : > { %v481_v34 = vadd.f32 %v1012_v29, %v480_v33 }
 0x125   : > { %v526_v35 = vmax.f32 %v481_v34, 0.0 }
 0x127   : > { %762 = vmatmul.msk.f32.gmra.mxu2 %vm549_vm1, %v526_v35 }
 0x12a   : > { %v483_v36 = vpop.f32.mrf.mxu1 }
 0x12b   : > { %v484_v37 = vadd.f32 %v1012_v29, %v483_v36 }
 0x12d   : > { %v527_v38 = vmax.f32 %v484_v37, 0.0 }
 0x12f   : > { %763 = vmatmul.msk.f32.gmra.mxu2 %vm549_vm1, %v527_v38 }
 0x132   : > { %v486_v39 = vpop.f32.mrf.mxu1 }
 0x133   : > { %v487_v40 = vadd.f32 %v1012_v29, %v486_v39 }
 0x135   : > { %v528_v41 = vmax.f32 %v487_v40, 0.0 }
 0x137   : > { %764 = vmatmul.msk.f32.gmra.mxu2 %vm549_vm1, %v528_v41 }
 0x13a   : > { %v489_v42 = vpop.f32.mrf.mxu1 }
 0x13b   : > { %v490_v43 = vadd.f32 %v1012_v29, %v489_v42 }
 0x13d   : > { %v529_v44 = vmax.f32 %v490_v43, 0.0 }
 0x13f   : > { %765 = vmatmul.msk.f32.gmra.mxu2 %vm549_vm1, %v529_v44 }
 0x142   : > { %v492_v45 = vpop.f32.mrf.mxu1 }
 0x143   : > { %v493_v46 = vadd.f32 %v1012_v29, %v492_v45 }
 0x145   : > { %v530_v47 = vmax.f32 %v493_v46, 0.0 }
 0x147   : > { %766 = vmatmul.msk.f32.gmra.mxu2 %vm549_vm1, %v530_v47 }
 0x14a   : > { %v495_v48 = vpop.f32.mrf.mxu1 }
 0x14b   : > { %v496_v49 = vadd.f32 %v1012_v29, %v495_v48 }
 0x14d   : > { %v531_v50 = vmax.f32 %v496_v49, 0.0 }
 0x14f   : > { %767 = vmatmul.msk.f32.gmra.mxu2 %vm549_vm1, %v531_v50 }
 0x152   : > { %v498_v51 = vpop.f32.mrf.mxu1 }
 0x153   : > { %v499_v52 = vadd.f32 %v1012_v29, %v498_v51 }
 0x155   : > { %v532_v53 = vmax.f32 %v499_v52, 0.0 }
 0x157   : > { %768 = vmatmul.msk.f32.gmra.mxu2 %vm549_vm1, %v532_v53 }
 0x15a   : > { %v501_v54 = vpop.f32.mrf.mxu1 }
 0x15b   : > { %v502_v55 = vadd.f32 %v1012_v29, %v501_v54 }
 0x15d   : > { %v533_v56 = vmax.f32 %v502_v55, 0.0 }
 0x15f   : > { %769 = vmatmul.msk.f32.gmra.mxu2 %vm549_vm1, %v533_v56 }
 0x162   : > { %v504_v57 = vpop.f32.mrf.mxu1 }
 0x163   : > { %v505_v58 = vadd.f32 %v1012_v29, %v504_v57 }
 0x165   : > { %v534_v59 = vmax.f32 %v505_v58, 0.0 }
 0x167   : > { %770 = vmatmul.msk.f32.gmra.mxu2 %vm549_vm1, %v534_v59 }
 0x16a   : > { %v507_v60 = vpop.f32.mrf.mxu1 }
 0x16b   : > { %v508_v61 = vadd.f32 %v1012_v29, %v507_v60 }
 0x16d   : > { %v535_v62 = vmax.f32 %v508_v61, 0.0 }
 0x16f   : > { %771 = vmatmul.msk.f32.gmra.mxu2 %vm549_vm1, %v535_v62 }
 0x178   : > { %v510_v63 = vpop.f32.mrf.mxu3 }
 0x179   : > { %v511_v0 = vadd.f32 %v1012_v29, %v510_v63 }
 0x17b   : > { %v536_v1 = vmax.f32 %v511_v0, 0.0 }
 0x17d   : > { %772 = vmatmul.msk.f32.gmra.mxu2 %vm549_vm1, %v536_v1 }
 0x180   : > { %v513_v2 = vpop.f32.mrf.mxu3 }
 0x181   : > { %v514_v3 = vadd.f32 %v1012_v29, %v513_v2 }
 0x183   : > { %v537_v4 = vmax.f32 %v514_v3, 0.0 }
 0x185   : > { %773 = vmatmul.msk.f32.gmra.mxu2 %vm549_vm1, %v537_v4 }
 0x188   : > { %v516_v5 = vpop.f32.mrf.mxu3 }
 0x189   : > { %v517_v6 = vadd.f32 %v1012_v29, %v516_v5 }
 0x18b   : > { %v538_v7 = vmax.f32 %v517_v6, 0.0 }
 0x18d   : > { %774 = vmatmul.msk.f32.gmra.mxu2 %vm549_vm1, %v538_v7 }
 0x190   : > { %v519_v8 = vpop.f32.mrf.mxu3 }
 0x191   : > { %v520_v9 = vadd.f32 %v1012_v29, %v519_v8 }
 0x193   : > { %v539_v10 = vmax.f32 %v520_v9, 0.0 }
 0x195   : > { %775 = vmatmul.msk.f32.gmra.mxu2 %vm549_vm1, %v539_v10 }
 0x198   : > { %v522_v11 = vpop.f32.mrf.mxu3 }
 0x199   : > { %v523_v12 = vadd.f32 %v1012_v29, %v522_v11 }
 0x19b   : > { %v540_v13 = vmax.f32 %v523_v12, 0.0 }
 0x19d   : > { %776 = vmatmul.msk.f32.gmra.mxu2 %vm549_vm1, %v540_v13 }
 0x1a2   : > { %v615_v15 = vpop.f32.mrf.mxu2 }
 0x1a3   : > { %v616_v16 = vadd.f32 %v805_v14, %v615_v15 }
 0x1a5   : > { %664 = vst.msk [vmem:[%s1054_s12] sm:$0xff] %vm663_vm2, %v616_v16 }
 0x1aa   : > { %v618_v17 = vpop.f32.mrf.mxu2 }
 0x1ab   : > { %v619_v18 = vadd.f32 %v805_v14, %v618_v17 }
 0x1ad   : > { %665 = vst.msk [vmem:[%s1054_s12 + $0x8] sm:$0xff] %vm663_vm2, %v619_v18 }
 0x1b2   : > { %v621_v19 = vpop.f32.mrf.mxu2 }
 0x1b3   : > { %v622_v20 = vadd.f32 %v805_v14, %v621_v19 }
 0x1b5   : > { %666 = vst.msk [vmem:[%s1054_s12 + $0x10] sm:$0xff] %vm663_vm2, %v622_v20 }
 0x1ba   : > { %v624_v21 = vpop.f32.mrf.mxu2 }
 0x1bb   : > { %v625_v22 = vadd.f32 %v805_v14, %v624_v21 }
 0x1bd   : > { %667 = vst.msk [vmem:[%s1054_s12 + $0x18] sm:$0xff] %vm663_vm2, %v625_v22 }
 0x1c2   : > { %v627_v23 = vpop.f32.mrf.mxu2 }
 0x1c3   : > { %v628_v24 = vadd.f32 %v805_v14, %v627_v23 }
 0x1c5   : > { %668 = vst.msk [vmem:[%s1054_s12 + $0x20] sm:$0xff] %vm663_vm2, %v628_v24 }
 0x1ca   : > { %v630_v25 = vpop.f32.mrf.mxu2 }
 0x1cb   : > { %v631_v26 = vadd.f32 %v805_v14, %v630_v25 }
 0x1cd   : > { %669 = vst.msk [vmem:[%s1054_s12 + $0x28] sm:$0xff] %vm663_vm2, %v631_v26 }
 0x1d2   : > { %v633_v27 = vpop.f32.mrf.mxu2 }
 0x1d3   : > { %v634_v28 = vadd.f32 %v805_v14, %v633_v27 }
 0x1d5   : > { %670 = vst.msk [vmem:[%s1054_s12 + $0x30] sm:$0xff] %vm663_vm2, %v634_v28 }
 0x1da   : > { %v636_v29 = vpop.f32.mrf.mxu2 }
 0x1db   : > { %v637_v30 = vadd.f32 %v805_v14, %v636_v29 }
 0x1dd   : > { %671 = vst.msk [vmem:[%s1054_s12 + $0x38] sm:$0xff] %vm663_vm2, %v637_v30 }
 0x1e2   : > { %v639_v31 = vpop.f32.mrf.mxu2 }
 0x1e3   : > { %v640_v32 = vadd.f32 %v805_v14, %v639_v31 }
 0x1e5   : > { %672 = vst.msk [vmem:[%s1054_s12 + $0x40] sm:$0xff] %vm663_vm2, %v640_v32 }
 0x1ea   : > { %v642_v33 = vpop.f32.mrf.mxu2 }
 0x1eb   : > { %v643_v34 = vadd.f32 %v805_v14, %v642_v33 }
 0x1ed   : > { %673 = vst.msk [vmem:[%s1054_s12 + $0x48] sm:$0xff] %vm663_vm2, %v643_v34 }
 0x1f2   : > { %v645_v35 = vpop.f32.mrf.mxu2 }
 0x1f3   : > { %v646_v36 = vadd.f32 %v805_v14, %v645_v35 }
 0x1f5   : > { %674 = vst.msk [vmem:[%s1054_s12 + $0x50] sm:$0xff] %vm663_vm2, %v646_v36 }
 0x200   : > { %v648_v37 = vpop.f32.mrf.mxu2 }
 0x201   : > { %v649_v38 = vadd.f32 %v805_v14, %v648_v37 }
 0x203   : > { %675 = vst.msk [vmem:[%s1054_s12 + $0x58] sm:$0xff] %vm663_vm2, %v649_v38 }
 0x208   : > { %v651_v39 = vpop.f32.mrf.mxu2 }
 0x209   : > { %v652_v40 = vadd.f32 %v805_v14, %v651_v39 }
 0x20b   : > { %676 = vst.msk [vmem:[%s1054_s12 + $0x60] sm:$0xff] %vm663_vm2, %v652_v40 }
 0x210   : > { %v654_v41 = vpop.f32.mrf.mxu2 }
 0x211   : > { %v655_v42 = vadd.f32 %v805_v14, %v654_v41 }
 0x213   : > { %677 = vst.msk [vmem:[%s1054_s12 + $0x68] sm:$0xff] %vm663_vm2, %v655_v42 }
 0x218   : > { %v657_v43 = vpop.f32.mrf.mxu2 }
 0x219   : > { %v658_v44 = vadd.f32 %v805_v14, %v657_v43 }
 0x21b   : > { %678 = vst.msk [vmem:[%s1054_s12 + $0x70] sm:$0xff] %vm663_vm2, %v658_v44 }
 0x220   : > { %v660_v45 = vpop.f32.mrf.mxu2 }
 0x221   : > { %v661_v46 = vadd.f32 %v805_v14, %v660_v45 }
 0x223   : > { %679 = vst.msk [vmem:[%s1054_s12 + $0x78] sm:$0xff] %vm663_vm2, %v661_v46 }
 0x224 PF: > { %s17_s24 = sadd.s32 1, %s812_s24  }
 0x225   : > { %p14_p4 = scmp.ge.s32.totalorder %s17_s24, 4  }
 0x227   :  { %16 = sbr.rel (!%p14_p4) target bundleno = 1 (0x1), region = 78 }

</bundles_post_ra>
